<compile_context>
chip_gen: v7x
topology: tpu7x:2x2x1
jax: 0.10.0
libtpu: 0.0.40
codegen_flags: <defaults>
</compile_context>

<pallas_src>
import numpy as np
import jax
import jax.numpy as jnp
from jax.experimental import pallas as pl
from jax.experimental.pallas import tpu as pltpu


_VMEM_BUDGET = 40 * 1024 * 1024   # tile-planning budget (headroom on v7x's 64 MiB VMEM)
_VMEM_LIMIT = 48 * 1024 * 1024    # scoped VMEM limit requested from the compiler


def _round_up(x: int, m: int) -> int:
    return ((x + m - 1) // m) * m


def _ceil_div(a: int, b: int) -> int:
    return -(-a // b)


# --------------------------------------------------------------------- tile planning
def _k_plans(lengths, tk_max):
    """Per-feature (tk, gk, l_pad). Features with L <= tk_max stay whole (no padding);
    larger ones are split into the same number of lane-aligned K tiles (gk = grid_k)."""
    big = [L for L in lengths if L > tk_max]
    if not big:
        return [(L, 1, L) for L in lengths]
    grid_k = max(_ceil_div(L, tk_max) for L in big)
    plans = []
    for L in lengths:
        if L <= tk_max:
            plans.append((L, 1, L))
        else:
            tk = max(128, _round_up(_ceil_div(L, grid_k), 128))
            plans.append((tk, grid_k, tk * grid_k))
    return plans


def _plan_tiles(batch, lengths, d_pad, x_items, p_items, out_item, budget):
    nf = len(lengths)
    pack = max(8, 32 // min(x_items))                 # sublane packing (8/16/32)
    tm_full = _round_up(batch, pack)
    # Keep >= ~4 M grid steps when the batch allows it (pipelining + v7x two-core split).
    tm_cap = min(tm_full, max(pack, _round_up(_ceil_div(batch, 4), pack)))
    tm_cands = sorted(
        {t for t in (1024, 512, 256, 128, 64, 32, 16, 8)
         if t % pack == 0 and t <= tm_cap} | {tm_cap},
        reverse=True)

    def vmem_need(tm, plans):
        n = tm * nf * d_pad * (2 * out_item + 4)      # out tiles (x2 bufs) + f32 acc
        n += 2 * nf * d_pad * 4                       # inv (f32)
        for (tk, _, _), xi, pi in zip(plans, x_items, p_items):
            n += 2 * tm * tk * xi                     # x tile, double-buffered
            n += 2 * tk * d_pad * pi                  # P tile, double-buffered
        return n

    # Phase 1: every pooling matrix VMEM-resident (no K axis, no x padding copy).
    whole = _k_plans(lengths, max(lengths))
    for tm in tm_cands:
        if vmem_need(tm, whole) <= budget:
            return tm, whole
    # Phase 2: stream K; prefer the biggest M tile, then the biggest K tile that fits.
    for tm in tm_cands:
        for tk_max in (4096, 2048, 1024, 512, 256, 128):
            plans = _k_plans(lengths, tk_max)
            if vmem_need(tm, plans) <= budget:
                return tm, plans
    # Fallback: smallest tiles; rely on vmem_limit_bytes headroom.
    return tm_cands[-1], _k_plans(lengths, 128)


# ------------------------------------------------------------------------- constants
def _build_tables(lengths, plans, output_dim, d_pad, p_dtypes):
    """Per-feature 0/1 pooling matrices (PyTorch adaptive_avg_pool1d bin boundaries,
    zero rows in the K padding) and one f32 reciprocal-bin-size row vector."""
    nf = len(lengths)
    p_mats = []
    inv = np.zeros((1, nf * d_pad), dtype=np.float32)
    for fi, (L, (_, _, l_pad)) in enumerate(zip(lengths, plans)):
        P = np.zeros((l_pad, d_pad), dtype=np.float32)
        for j in range(output_dim):
            start = (j * L) // output_dim
            end = _ceil_div((j + 1) * L, output_dim)
            P[start:end, j] = 1.0
            inv[0, fi * d_pad + j] = 1.0 / float(end - start)
        p_mats.append(jnp.asarray(P, dtype=p_dtypes[fi]))
    return p_mats, jnp.asarray(inv)


# ----------------------------------------------------------------------------- kernel
def _make_kernel(nf, d_pad, gks, grid_k, mxu_dtypes):
    def kernel(*refs):
        x_refs = refs[:nf]
        p_refs = refs[nf:2 * nf]
        inv_ref = refs[2 * nf]
        o_ref = refs[2 * nf + 1]
        acc_ref = refs[2 * nf + 2]
        k = pl.program_id(1)

        @pl.when(k == 0)
        def _init():
            acc_ref[...] = jnp.zeros_like(acc_ref)

        for fi in range(nf):
            def _mm(fi=fi):
                x = x_refs[fi][...]
                if mxu_dtypes[fi] is not None:
                    x = x.astype(mxu_dtypes[fi])
                lo = fi * d_pad
                acc_ref[:, lo:lo + d_pad] += jnp.dot(
                    x, p_refs[fi][...], preferred_element_type=jnp.float32)
            if gks[fi] == grid_k:
                _mm()                       # this feature has a tile for every K step
            else:
                pl.when(k == 0)(_mm)        # whole-L resident feature: compute once

        @pl.when(k == grid_k - 1)
        def _store():
            o_ref[...] = (acc_ref[...] * inv_ref[...]).astype(o_ref.dtype)

    return kernel


def _x_spec(tm, tk, gk):
    if gk == 1:
        return pl.BlockSpec((tm, tk), lambda m, k: (m, 0))
    return pl.BlockSpec((tm, tk), lambda m, k: (m, k))


def _p_spec(tk, cols, gk):
    if gk == 1:
        return pl.BlockSpec((tk, cols), lambda m, k: (0, 0))
    return pl.BlockSpec((tk, cols), lambda m, k: (k, 0))


# ---------------------------------------------------------------------------- wrapper
def preprocessing(features, output_dim: int, *, matmul_dtype=None,
                  vmem_budget_bytes: int = _VMEM_BUDGET) -> jax.Array:
    """Pallas equivalent of Preprocessing.forward.

    Each feature is flattened to (B, L_i) (mirrors torch `feature.reshape(len(f),1,-1)`),
    adaptive-average-pooled to `output_dim`, and stacked along dim 1.
    Returns (B, num_features, output_dim).
    """
    nf = len(features)
    batch = features[0].shape[0]
    flats = [jnp.reshape(f, (batch, -1)) for f in features]
    lengths = [int(f.shape[1]) for f in flats]
    out_dtype = jnp.result_type(*[f.dtype for f in flats])
    d_pad = _round_up(output_dim, 128)               # lane-dense columns per feature

    mxu_dtypes = [matmul_dtype] * nf
    p_dtypes = [matmul_dtype if matmul_dtype is not None else f.dtype for f in flats]
    x_items = [np.dtype(f.dtype).itemsize for f in flats]
    p_items = [np.dtype(d).itemsize for d in p_dtypes]
    out_item = np.dtype(out_dtype).itemsize

    tm, plans = _plan_tiles(batch, lengths, d_pad, x_items, p_items, out_item,
                            vmem_budget_bytes)
    gks = [p[1] for p in plans]
    grid_m = _ceil_div(batch, tm)
    grid_k = max(gks)

    # Zero-pad K only for features that are K-tiled (their P rows there are zero too).
    xs = [x if l_pad == L else jnp.pad(x, ((0, 0), (0, l_pad - L)))
          for x, L, (_, _, l_pad) in zip(flats, lengths, plans)]
    p_mats, inv = _build_tables(lengths, plans, output_dim, d_pad, p_dtypes)

    in_specs = (
        [_x_spec(tm, tk, gk) for (tk, gk, _) in plans]
        + [_p_spec(tk, d_pad, gk) for (tk, gk, _) in plans]
        + [pl.BlockSpec((1, nf * d_pad), lambda m, k: (0, 0))]
    )
    out_spec = pl.BlockSpec((tm, nf * d_pad), lambda m, k: (m, 0))

    flops = int(2 * batch * sum(p[2] for p in plans) * d_pad)
    bytes_accessed = int(sum(batch * p[2] * xi for p, xi in zip(plans, x_items))
                         + sum(p[2] * d_pad * pi for p, pi in zip(plans, p_items))
                         + batch * nf * d_pad * out_item)

    out = pl.pallas_call(
        _make_kernel(nf, d_pad, gks, grid_k, mxu_dtypes),
        out_shape=jax.ShapeDtypeStruct((batch, nf * d_pad), out_dtype),
        grid=(grid_m, grid_k),
        in_specs=in_specs,
        out_specs=out_spec,
        scratch_shapes=[pltpu.VMEM((tm, nf * d_pad), jnp.float32)],
        compiler_params=pltpu.CompilerParams(
            dimension_semantics=("parallel", "arbitrary"),
            vmem_limit_bytes=_VMEM_LIMIT,
        ),
        cost_estimate=pl.CostEstimate(
            flops=flops, transcendentals=0, bytes_accessed=bytes_accessed),
    )(*xs, *p_mats, inv)

    out = out.reshape(batch, nf, d_pad)
    if d_pad != output_dim:
        out = out[:, :, :output_dim]     # extra slice pass only when padding was needed
    return out


# -------------------------------------------------------------------------- reference
def _numpy_reference(features, output_dim: int):
    outs = []
    for feat in features:
        x = np.asarray(feat).reshape(feat.shape[0], -1).astype(np.float32)
        _, L = x.shape
        pooled = np.zeros((x.shape[0], output_dim), dtype=np.float32)
        for j in range(output_dim):
            start = (j * L) // output_dim
            end = _ceil_div((j + 1) * L, output_dim)
            pooled[:, j] = x[:, start:end].mean(axis=1)
        outs.append(pooled)
    return np.stack(outs, axis=1)


if __name__ == "__main__":
    key = jax.random.PRNGKey(0)
    batch = 8
    channels = [8, 64]          # per-layer channel counts (PatchCore passes a list)
    patch = 3                   # patch spatial extent -> L_i = C_i * 3 * 3
    output_dim = 32

    keys = jax.random.split(key, len(channels))
    features = [
        jax.random.normal(k, (batch, c, patch, patch), dtype=jnp.float32)
        for k, c in zip(keys, channels)
    ]
    ref = _numpy_reference(features, output_dim)

    # Path 1: pooling matrices VMEM-resident (single K step per feature).
    out = jax.block_until_ready(preprocessing(features, output_dim))
    assert out.shape == (batch, len(channels), output_dim), out.shape
    assert np.allclose(np.asarray(out), ref, atol=1e-5, rtol=1e-5), (
        float(np.abs(np.asarray(out) - ref).max()))

    # Path 2: force the K-tiled accumulator path (tiny planning budget) and re-check.
    out_kt = jax.block_until_ready(
        preprocessing(features, output_dim, vmem_budget_bytes=1 << 12))
    assert np.allclose(np.asarray(out_kt), ref, atol=1e-5, rtol=1e-5), (
        float(np.abs(np.asarray(out_kt) - ref).max()))

    print("KERNEL_OK")
</pallas_src>

<mosaic_0001>
module attributes {stable_mosaic.version = 11 : i64} {
  func.func @kernel(%arg0: i32, %arg1: i32, %arg2: memref<8x72xf32, #tpu.memory_space<vmem>>, %arg3: memref<8x576xf32, #tpu.memory_space<vmem>>, %arg4: memref<72x128xf32, #tpu.memory_space<vmem>>, %arg5: memref<576x128xf32, #tpu.memory_space<vmem>>, %arg6: memref<1x256xf32, #tpu.memory_space<vmem>>, %arg7: memref<8x256xf32, #tpu.memory_space<vmem>>, %arg8: memref<8x256xf32, #tpu.memory_space<vmem>>) attributes {dimension_semantics = [#tpu.dimension_semantics<parallel>, #tpu.dimension_semantics<arbitrary>], iteration_bounds = array<i64: 1, 1>, scalar_prefetch = 0 : i64, scratch_operands = 1 : i64, tpu.core_type = #tpu.core_type<tc>, window_params = [{transform_indices = @transform_0, window_bounds = array<i64: 8, 72>}, {transform_indices = @transform_1, window_bounds = array<i64: 8, 576>}, {pipeline_mode = #tpu.pipeline_mode<synchronous>, transform_indices = @transform_2, window_bounds = array<i64: 72, 128>}, {pipeline_mode = #tpu.pipeline_mode<synchronous>, transform_indices = @transform_3, window_bounds = array<i64: 576, 128>}, {pipeline_mode = #tpu.pipeline_mode<synchronous>, transform_indices = @transform_4, window_bounds = array<i64: 1, 256>}, {transform_indices = @transform_5, window_bounds = array<i64: 8, 256>}]} {
    %c0_i32 = arith.constant 0 : i32
    %0 = arith.cmpi eq, %arg1, %c0_i32 : i32
    %1 = arith.extui %0 : i1 to i32
    %c0_i32_0 = arith.constant 0 : i32
    %2 = arith.cmpi ne, %1, %c0_i32_0 : i32
    scf.if %2 {
      %cst_18 = arith.constant 0.000000e+00 : f32
      %18 = vector.broadcast %cst_18 : f32 to vector<8x256xf32>
      %c0_19 = arith.constant 0 : index
      %c0_20 = arith.constant 0 : index
      %19 = vector.load %arg8[%c0_19, %c0_20] : memref<8x256xf32, #tpu.memory_space<vmem>>, vector<8x256xf32>
      tpu.vector_store %arg8[%c0_19, %c0_20], %18 {strides = array<i32>} : memref<8x256xf32, #tpu.memory_space<vmem>>, vector<8x256xf32>,
    } else {
    }
    %c0 = arith.constant 0 : index
    %c0_1 = arith.constant 0 : index
    %3 = vector.load %arg2[%c0, %c0_1] : memref<8x72xf32, #tpu.memory_space<vmem>>, vector<8x72xf32>
    %c0_2 = arith.constant 0 : index
    %c0_3 = arith.constant 0 : index
    %4 = vector.load %arg8[%c0_2, %c0_3] : memref<8x256xf32, #tpu.memory_space<vmem>>, vector<8x128xf32>
    %c0_4 = arith.constant 0 : index
    %c0_5 = arith.constant 0 : index
    %5 = vector.load %arg4[%c0_4, %c0_5] : memref<72x128xf32, #tpu.memory_space<vmem>>, vector<72x128xf32>
    %cst = arith.constant dense<0.000000e+00> : vector<8x128xf32>
    %6 = tpu.matmul %3, %5, %cst {dimension_numbers = #tpu.dot_dimension_numbers<[1], [0], [0], [1], [0, 0, 1, 1], [], []>} : vector<8x72xf32>, vector<72x128xf32>, vector<8x128xf32> -> vector<8x128xf32>
    %7 = arith.addf %4, %6 : vector<8x128xf32>
    %c0_6 = arith.constant 0 : index
    %c0_7 = arith.constant 0 : index
    %8 = vector.load %arg8[%c0_6, %c0_7] : memref<8x256xf32, #tpu.memory_space<vmem>>, vector<8x128xf32>
    tpu.vector_store %arg8[%c0_6, %c0_7], %7 {strides = array<i32>} : memref<8x256xf32, #tpu.memory_space<vmem>>, vector<8x128xf32>,
    %c0_8 = arith.constant 0 : index
    %c0_9 = arith.constant 0 : index
    %9 = vector.load %arg3[%c0_8, %c0_9] : memref<8x576xf32, #tpu.memory_space<vmem>>, vector<8x576xf32>
    %c0_10 = arith.constant 0 : index
    %c128 = arith.constant 128 : index
    %10 = vector.load %arg8[%c0_10, %c128] : memref<8x256xf32, #tpu.memory_space<vmem>>, vector<8x128xf32>
    %c0_11 = arith.constant 0 : index
    %c0_12 = arith.constant 0 : index
    %11 = vector.load %arg5[%c0_11, %c0_12] : memref<576x128xf32, #tpu.memory_space<vmem>>, vector<576x128xf32>
    %cst_13 = arith.constant dense<0.000000e+00> : vector<8x128xf32>
    %12 = tpu.matmul %9, %11, %cst_13 {dimension_numbers = #tpu.dot_dimension_numbers<[1], [0], [0], [1], [0, 0, 1, 1], [], []>} : vector<8x576xf32>, vector<576x128xf32>, vector<8x128xf32> -> vector<8x128xf32>
    %13 = arith.addf %10, %12 : vector<8x128xf32>
    %c0_14 = arith.constant 0 : index
    %c128_15 = arith.constant 128 : index
    %14 = vector.load %arg8[%c0_14, %c128_15] : memref<8x256xf32, #tpu.memory_space<vmem>>, vector<8x128xf32>
    tpu.vector_store %arg8[%c0_14, %c128_15], %13 {strides = array<i32>} : memref<8x256xf32, #tpu.memory_space<vmem>>, vector<8x128xf32>,
    %c0_i32_16 = arith.constant 0 : i32
    %15 = arith.cmpi eq, %arg1, %c0_i32_16 : i32
    %16 = arith.extui %15 : i1 to i32
    %c0_i32_17 = arith.constant 0 : i32
    %17 = arith.cmpi ne, %16, %c0_i32_17 : i32
    scf.if %17 {
      %c0_18 = arith.constant 0 : index
      %c0_19 = arith.constant 0 : index
      %18 = vector.load %arg8[%c0_18, %c0_19] : memref<8x256xf32, #tpu.memory_space<vmem>>, vector<8x256xf32>
      %c0_20 = arith.constant 0 : index
      %c0_21 = arith.constant 0 : index
      %19 = vector.load %arg6[%c0_20, %c0_21] : memref<1x256xf32, #tpu.memory_space<vmem>>, vector<1x256xf32>
      %20 = vector.broadcast %19 : vector<1x256xf32> to vector<8x256xf32>
      %21 = arith.mulf %18, %20 : vector<8x256xf32>
      %c0_22 = arith.constant 0 : index
      %c0_23 = arith.constant 0 : index
      %22 = vector.load %arg7[%c0_22, %c0_23] : memref<8x256xf32, #tpu.memory_space<vmem>>, vector<8x256xf32>
      tpu.vector_store %arg7[%c0_22, %c0_23], %21 {strides = array<i32>} : memref<8x256xf32, #tpu.memory_space<vmem>>, vector<8x256xf32>,
    } else {
    }
    return
  }
  func.func @transform_0(%arg0: i32, %arg1: i32) -> (i32, i32) {
    %c0_i32 = arith.constant 0 : i32
    %c0_i32_0 = arith.constant 0 : i32
    return %arg0, %c0_i32 : i32, i32
  }
  func.func @transform_1(%arg0: i32, %arg1: i32) -> (i32, i32) {
    %c0_i32 = arith.constant 0 : i32
    %c0_i32_0 = arith.constant 0 : i32
    return %arg0, %c0_i32 : i32, i32
  }
  func.func @transform_2(%arg0: i32, %arg1: i32) -> (i32, i32) {
    %c0_i32 = arith.constant 0 : i32
    %c0_i32_0 = arith.constant 0 : i32
    %c0_i32_1 = arith.constant 0 : i32
    return %c0_i32, %c0_i32_0 : i32, i32
  }
  func.func @transform_3(%arg0: i32, %arg1: i32) -> (i32, i32) {
    %c0_i32 = arith.constant 0 : i32
    %c0_i32_0 = arith.constant 0 : i32
    %c0_i32_1 = arith.constant 0 : i32
    return %c0_i32, %c0_i32_0 : i32, i32
  }
  func.func @transform_4(%arg0: i32, %arg1: i32) -> (i32, i32) {
    %c0_i32 = arith.constant 0 : i32
    %c0_i32_0 = arith.constant 0 : i32
    %c0_i32_1 = arith.constant 0 : i32
    return %c0_i32, %c0_i32_0 : i32, i32
  }
  func.func @transform_5(%arg0: i32, %arg1: i32) -> (i32, i32) {
    %c0_i32 = arith.constant 0 : i32
    %c0_i32_0 = arith.constant 0 : i32
    return %arg0, %c0_i32 : i32, i32
  }
}

</mosaic_0001>

<bundles_post_ra>
// kernel: tpu_custom_call.1
= control target key start
LH: loop header
LB: loop body
LE: loop exit
PB: predicated region body
PF: predicated region fallthrough
CT: control target
= control target key end

     0   :  { %10 = vsyncpa [#allocation4], 0  ;;  %s961_s0 = inlined_call_operand.hbm [shape: f32[8,72], index: 0, kind: input, shape index: {}]   ;;  %s962_s1 = inlined_call_operand.hbm [shape: f32[8,576], index: 1, kind: input, shape index: {}]   ;;  %s963_s2 = inlined_call_operand.hbm [shape: f32[72,128], index: 2, kind: input, shape index: {}]   ;;  %s964_s3 = inlined_call_operand.hbm [shape: f32[576,128], index: 3, kind: input, shape index: {}]   ;;  %s965_s4 = inlined_call_operand.vmem [shape: f32[1,256], index: 4, kind: input, shape index: {}]   ;;  %s966_s5 = inlined_call_operand.hbm [shape: f32[8,256], index: 5, kind: output, shape index: {}]  }
   0x1   :  { %11 = vsyncpa [#allocation7], 0 }
   0x2   :  { %12 = vsyncpa [#allocation10], 0 }
   0x3   :  { %13 = vsyncpa [#allocation5], 0  ;;  %s844_s18 = smov [#allocation6]   ;;  %s845_s20 = smov [#allocation3]  }
   0x4   :  { %s30_s19 = sshll.u32 %s844_s18, 4  ;;  %s20_s21 = sshll.u32 %s845_s20, 4  ;;  %s31_s19 = int_to_ptr.vmem [resolvable:$true] %s30_s19  ;;  %s21_s21 = int_to_ptr.vmem [resolvable:$true] %s20_s21 }
   0x5   :  { %s726_s24 = scalar_lea.hbm %s962_s1, 640 }
   0x6   :  { %p727_p0 = scmp.ne.s32.totalorder %s962_s1, %s726_s24  ;;  %p730_p1 = scmp.lt.u32.totalorder %s726_s24, %s962_s1 }
   0x8   :  { %p732_p2 = pnand %p730_p1, %p727_p0 }
   0xa   :  { %735 = shalt.err (!%p732_p2)
}
   0xb   :  { %s736_s29 = scalar_lea.vmem %s31_s19, 640  ;;  %p741_p4 = scmp.lt.s32.totalorder %s31_s19, %s31_s19 }
   0xc   :  { %p737_p3 = scmp.ne.s32.totalorder %s31_s19, %s736_s29  ;;  %p742_p5 = scmp.lt.s32.totalorder %s736_s29, %s736_s29 }
   0xe   :  { %p743_p6 = por %p742_p5, %p741_p4 }
  0x10   :  { %p744_p7 = pnand %p743_p6, %p737_p3 }
  0x12   :  { %747 = shalt.err (!%p744_p7)
}
  0x13   :  { %33 = dma.hbm_to_vmem [thread:$0]  %s962_s1, 640, %s31_s19, [#allocation7]  }
  0x14   :  { %s748_s9 = scalar_lea.hbm %s961_s0, 128 }
  0x15   :  { %p749_p8 = scmp.ne.s32.totalorder %s961_s0, %s748_s9  ;;  %p752_p9 = scmp.lt.u32.totalorder %s748_s9, %s961_s0 }
  0x17   :  { %p754_p10 = pnand %p752_p9, %p749_p8 }
  0x19   :  { %757 = shalt.err (!%p754_p10)
}
  0x1a   :  { %s758_s14 = scalar_lea.vmem %s21_s21, 128  ;;  %p763_p12 = scmp.lt.s32.totalorder %s21_s21, %s21_s21 }
  0x1b   :  { %p759_p11 = scmp.ne.s32.totalorder %s21_s21, %s758_s14  ;;  %p764_p13 = scmp.lt.s32.totalorder %s758_s14, %s758_s14 }
  0x1d   :  { %p765_p0 = por %p764_p13, %p763_p12 }
  0x1f   :  { %p766_p1 = pnand %p765_p0, %p759_p11 }
  0x21   :  { %769 = shalt.err (!%p766_p1)
}
  0x22   :  { %23 = dma.hbm_to_vmem [thread:$0]  %s961_s0, 128, %s21_s21, [#allocation4]  }
  0x23   :  { %s846_s16 = smov [#allocation8]   ;;  %s770_s20 = scalar_lea.hbm %s963_s2, 1152 }
  0x24   :  { %s39_s17 = sshll.u32 %s846_s16, 4  ;;  %p771_p2 = scmp.ne.s32.totalorder %s963_s2, %s770_s20  ;;  %s40_s17 = int_to_ptr.vmem [resolvable:$true] %s39_s17 }
  0x25   :  { %p774_p3 = scmp.lt.u32.totalorder %s770_s20, %s963_s2 }
  0x27   :  { %p776_p4 = pnand %p774_p3, %p771_p2 }
  0x29   :  { %779 = shalt.err (!%p776_p4)
}
  0x2a   :  { %s780_s26 = scalar_lea.vmem %s40_s17, 1152  ;;  %p785_p6 = scmp.lt.s32.totalorder %s40_s17, %s40_s17 }
  0x2b   :  { %p781_p5 = scmp.ne.s32.totalorder %s40_s17, %s780_s26  ;;  %p786_p7 = scmp.lt.s32.totalorder %s780_s26, %s780_s26 }
  0x2d   :  { %p787_p8 = por %p786_p7, %p785_p6 }
  0x2f   :  { %p788_p9 = pnand %p787_p8, %p781_p5 }
  0x31   :  { %791 = shalt.err (!%p788_p9)
}
  0x32   :  { %s847_s0 = smov 128   ;;  %s848_s21 = smov 8  }
  0x33   :  { %45 = dma.hbm_to_vmem [thread:$0]  %s963_s2, 1152, %s40_s17, [#allocation7], %s847_s0, %s847_s0, %s848_s21  }
  0x34   :  { %s849_s29 = smov [#allocation9]   ;;  %s792_s8 = scalar_lea.hbm %s964_s3, 9216 }
  0x35   :  { %s51_s30 = sshll.u32 %s849_s29, 4  ;;  %p793_p10 = scmp.ne.s32.totalorder %s964_s3, %s792_s8  ;;  %s52_s30 = int_to_ptr.vmem [resolvable:$true] %s51_s30 }
  0x36   :  { %p796_p11 = scmp.lt.u32.totalorder %s792_s8, %s964_s3 }
  0x38   :  { %p798_p12 = pnand %p796_p11, %p793_p10 }
  0x3a   :  { %801 = shalt.err (!%p798_p12)
}
  0x3b   :  { %s802_s13 = scalar_lea.vmem %s52_s30, 9216  ;;  %p807_p0 = scmp.lt.s32.totalorder %s52_s30, %s52_s30 }
  0x3c   :  { %p803_p13 = scmp.ne.s32.totalorder %s52_s30, %s802_s13  ;;  %p808_p1 = scmp.lt.s32.totalorder %s802_s13, %s802_s13 }
  0x3e   :  { %p809_p2 = por %p808_p1, %p807_p0 }
  0x40   :  { %p810_p3 = pnand %p809_p2, %p803_p13 }
  0x42   :  { %813 = shalt.err (!%p810_p3)
}
  0x43   :  { %57 = dma.hbm_to_vmem [thread:$0]  %s964_s3, 9216, %s52_s30, [#allocation10], %s847_s0, %s847_s0, %s848_s21  }
  0x44   :  { %836 = dma.done.wait [#allocation4], 128  }
  0x45   :  { %837 = vsyncadd [#allocation4], 4294967168 }
  0x46   :  { %838 = dma.done.wait [#allocation7], 1792  }
  0x47   :  { %839 = vsyncadd [#allocation7], 4294965504 }
  0x48   :  { %840 = dma.done.wait [#allocation10], 9216  }
  0x49   :  { %841 = vsyncadd [#allocation10], 4294958080  ;;  %v850_v0 = vmov 0.0|0.0   ;;  %vm851_vm0 = vmmov 0   ;;  %v852_v1 = vmov 0.0   ;;  %v80_v2 = vld [vmem:[#allocation8] sm:$0xff] }
  0x4a   :  { %628 = vmatprep.subr.bf16.mxu0 %v850_v0  ;;  %606 = vmatprep.mubr.msk.f32.mxu0 %vm851_vm0, %v852_v1  ;;  %v81_v3 = vld [vmem:[#allocation8 + $0x8] sm:$0xff]  ;;  %v82_v4 = vld [vmem:[#allocation8 + $0x10] sm:$0xff]  ;;  %v83_v6 = vld [vmem:[#allocation8 + $0x18] sm:$0xff]  ;;  %vm89_vm1 = vcmask 588800   ;;  %vm243_vm2 = vcmask 523264   ;;  %s853_s15 = smov [#allocation11]  }
  0x4b   :  { %v629_v5 = vpack.c.bf16 %v81_v3, %v80_v2  ;;  %v187_v7 = vld [vmem:[#allocation9 + $0x80] sm:$0xff]  ;;  %v188_v8 = vld [vmem:[#allocation9 + $0x88] sm:$0xff]  ;;  %v632_v12 = vpack.c.bf16 %v83_v6, %v82_v4  ;;  %v84_v14 = vld [vmem:[#allocation8 + $0x20] sm:$0xff]  ;;  %s486_s16 = sshll.u32 %s853_s15, 4  ;;  %s487_s16 = int_to_ptr.vmem [resolvable:$true] %s486_s16 }
  0x4c   :  { %v640_v9 = vpack.c.bf16 %v188_v8, %v187_v7  ;;  %v171_v10 = vld [vmem:[#allocation9] sm:$0xff]  ;;  %v172_v11 = vld [vmem:[#allocation9 + $0x8] sm:$0xff]  ;;  %v189_v15 = vld [vmem:[#allocation9 + $0x90] sm:$0xff]  ;;  %p819_p5 = scmp.lt.s32.totalorder %s487_s16, %s487_s16 }
  0x4d   :  { %630 = vmatpush3.bf16.msra.mxu0 %v629_v5  ;;  %v642_v13 = vpack.c.bf16 %v172_v11, %v171_v10  ;;  %v190_v16 = vld [vmem:[#allocation9 + $0x98] sm:$0xff]  ;;  %v85_v17 = vld [vmem:[#allocation8 + $0x28] sm:$0xff]  ;;  %v173_v19 = vld [vmem:[#allocation9 + $0x10] sm:$0xff] }
  0x4e   :  { %631 = vmatprep.subr.bf16.mxu0 %v850_v0  ;;  %641 = vmatprep.subr.bf16.mxu1 %v640_v9  ;;  %v644_v18 = vpack.c.bf16 %v190_v16, %v189_v15  ;;  %v174_v20 = vld [vmem:[#allocation9 + $0x18] sm:$0xff]  ;;  %v191_v22 = vld [vmem:[#allocation9 + $0xa0] sm:$0xff]  ;;  %v192_v23 = vld [vmem:[#allocation9 + $0xa8] sm:$0xff]  ;;  %v635_v27 = vpack.c.bf16 %v85_v17, %v84_v14 }
  0x4f   :  { %643 = vmatpush3.bf16.msra.mxu1 %v642_v13  ;;  %v646_v21 = vpack.c.bf16 %v174_v20, %v173_v19  ;;  %v648_v24 = vpack.c.bf16 %v192_v23, %v191_v22  ;;  %v175_v25 = vld [vmem:[#allocation9 + $0x20] sm:$0xff]  ;;  %v176_v26 = vld [vmem:[#allocation9 + $0x28] sm:$0xff]  ;;  %v193_v28 = vld [vmem:[#allocation9 + $0xb0] sm:$0xff] }
  0x50   :  { %645 = vmatprep.subr.bf16.mxu1 %v644_v18  ;;  %v194_v29 = vld [vmem:[#allocation9 + $0xb8] sm:$0xff]  ;;  %v86_v30 = vld [vmem:[#allocation8 + $0x30] sm:$0xff]  ;;  %v87_v31 = vld [vmem:[#allocation8 + $0x38] sm:$0xff]  ;;  %v650_v32 = vpack.c.bf16 %v176_v26, %v175_v25 }
  0x51   :  { %633 = vmatpush3.bf16.msra.mxu0 %v632_v12  ;;  %v652_v33 = vpack.c.bf16 %v194_v29, %v193_v28  ;;  %v177_v34 = vld [vmem:[#allocation9 + $0x30] sm:$0xff]  ;;  %v178_v35 = vld [vmem:[#allocation9 + $0x38] sm:$0xff]  ;;  %v638_v36 = vpack.c.bf16 %v87_v31, %v86_v30  ;;  %v195_v37 = vld [vmem:[#allocation9 + $0xc0] sm:$0xff] }
  0x52   :  { %634 = vmatprep.subr.bf16.mxu0 %v850_v0  ;;  %v196_v38 = vld [vmem:[#allocation9 + $0xc8] sm:$0xff]  ;;  %v219_v39 = vld [vmem:[#allocation9 + $0x180] sm:$0xff]  ;;  %v654_v41 = vpack.c.bf16 %v178_v35, %v177_v34  ;;  %v221_v45 = vld [vmem:[#allocation9 + $0x190] sm:$0xff] }
  0x53   :  { %647 = vmatpush3.bf16.msra.mxu1 %v646_v21  ;;  %v220_v40 = vld [vmem:[#allocation9 + $0x188] sm:$0xff]  ;;  %v203_v42 = vld [vmem:[#allocation9 + $0x100] sm:$0xff]  ;;  %v656_v44 = vpack.c.bf16 %v196_v38, %v195_v37  ;;  %v222_v48 = vld [vmem:[#allocation9 + $0x198] sm:$0xff] }
  0x54   :  { %649 = vmatprep.subr.bf16.mxu1 %v648_v24  ;;  %v204_v43 = vld [vmem:[#allocation9 + $0x108] sm:$0xff]  ;;  %v179_v46 = vld [vmem:[#allocation9 + $0x40] sm:$0xff]  ;;  %v197_v49 = vld [vmem:[#allocation9 + $0xd0] sm:$0xff]  ;;  %v672_v52 = vpack.c.bf16 %v220_v40, %v219_v39  ;;  %v676_v58 = vpack.c.bf16 %v222_v48, %v221_v45 }
  0x55   :  { %636 = vmatpush3.bf16.msra.mxu0 %v635_v27  ;;  %v180_v47 = vld [vmem:[#allocation9 + $0x48] sm:$0xff]  ;;  %v198_v50 = vld [vmem:[#allocation9 + $0xd8] sm:$0xff]  ;;  %v674_v54 = vpack.c.bf16 %v204_v43, %v203_v42  ;;  %v205_v56 = vld [vmem:[#allocation9 + $0x110] sm:$0xff] }
  0x56   :  { %637 = vmatprep.subr.bf16.mxu0 %v850_v0  ;;  %v88_v51 = vld [vmem:[#allocation8 + $0x40] sm:$0xff]  ;;  %v78_v53 = vld [vmem:[#allocation3] sm:$0xff]  ;;  %v658_v55 = vpack.c.bf16 %v180_v47, %v179_v46  ;;  %v660_v59 = vpack.c.bf16 %v198_v50, %v197_v49  ;;  %v223_v60 = vld [vmem:[#allocation9 + $0x1a0] sm:$0xff] }
  0x57   :  { %651 = vmatpush3.bf16.msra.mxu1 %v650_v32  ;;  %v206_v57 = vld [vmem:[#allocation9 + $0x118] sm:$0xff]  ;;  %v181_v61 = vld [vmem:[#allocation9 + $0x50] sm:$0xff]  ;;  %v224_v63 = vld [vmem:[#allocation9 + $0x1a8] sm:$0xff] }
  0x58   :  { %653 = vmatprep.subr.bf16.mxu1 %v652_v33  ;;  %v182_v62 = vld [vmem:[#allocation9 + $0x58] sm:$0xff]  ;;  %v199_v2 = vld [vmem:[#allocation9 + $0xe0] sm:$0xff]  ;;  %v200_v3 = vld [vmem:[#allocation9 + $0xe8] sm:$0xff]  ;;  %v678_v5 = vpack.c.bf16 %v206_v57, %v205_v56  ;;  %v680_v9 = vpack.c.bf16 %v224_v63, %v223_v60 }
  0x59   :  { %639 = vmatpush3.bf16.msra.mxu0 %v638_v36  ;;  %v166_v4 = vld [vmem:[#allocation6 + $0x8] sm:$0xff]  ;;  %v662_v6 = vpack.c.bf16 %v182_v62, %v181_v61  ;;  %v207_v7 = vld [vmem:[#allocation9 + $0x120] sm:$0xff]  ;;  %v208_v8 = vld [vmem:[#allocation9 + $0x128] sm:$0xff]  ;;  %v664_v10 = vpack.c.bf16 %v200_v3, %v199_v2 }
  0x5a   :  { %604 = vmatprep.subr.mxu0 %v852_v1  ;;  %v225_v11 = vld [vmem:[#allocation9 + $0x1b0] sm:$0xff]  ;;  %v183_v12 = vld [vmem:[#allocation9 + $0x60] sm:$0xff]  ;;  %v184_v13 = vld [vmem:[#allocation9 + $0x68] sm:$0xff]  ;;  %311 = vmatprep.mubr.f32.mxu1 %v166_v4  ;;  %v682_v17 = vpack.c.bf16 %v208_v8, %v207_v7  ;;  %v466_v4 = vlaneseq }
  0x5b   :  { %655 = vmatpush3.bf16.msra.mxu1 %v654_v41  ;;  %v226_v14 = vld [vmem:[#allocation9 + $0x1b8] sm:$0xff]  ;;  %v201_v15 = vld [vmem:[#allocation9 + $0xf0] sm:$0xff]  ;;  %v666_v18 = vpack.c.bf16 %v184_v13, %v183_v12  ;;  %v227_v25 = vld [vmem:[#allocation9 + $0x1c0] sm:$0xff] }
  0x5c   :  { %657 = vmatprep.subr.bf16.mxu1 %v656_v44  ;;  %v202_v16 = vld [vmem:[#allocation9 + $0xf8] sm:$0xff]  ;;  %v209_v19 = vld [vmem:[#allocation9 + $0x130] sm:$0xff]  ;;  %v684_v20 = vpack.c.bf16 %v226_v14, %v225_v11  ;;  %v228_v26 = vld [vmem:[#allocation9 + $0x1c8] sm:$0xff] }
  0x5d   :  { %605 = vmatpush3.msra.mxu0 %v88_v51  ;;  %v210_v21 = vld [vmem:[#allocation9 + $0x138] sm:$0xff]  ;;  %v668_v22 = vpack.c.bf16 %v202_v16, %v201_v15  ;;  %v185_v23 = vld [vmem:[#allocation9 + $0x70] sm:$0xff]  ;;  %v168_v27 = vld [vmem:[#allocation6 + $0x18] sm:$0xff]  ;;  %v688_v31 = vpack.c.bf16 %v228_v26, %v227_v25 }
  0x5e   :  { %607 = vmatmul.mubr.msk.f32.vlgmr.msra.gmra.mrb[0].mxu0 %vm89_vm1, %v78_v53  ;;  %673 = vmatprep.subr.bf16.mxu0 %v672_v52  ;;  %v186_v24 = vld [vmem:[#allocation9 + $0x78] sm:$0xff]  ;;  %v686_v28 = vpack.c.bf16 %v210_v21, %v209_v19  ;;  %v211_v30 = vld [vmem:[#allocation9 + $0x140] sm:$0xff]  ;;  %v212_v32 = vld [vmem:[#allocation9 + $0x148] sm:$0xff] }
  0x5f   :  { %675 = vmatpush3.bf16.msra.mxu0 %v674_v54  ;;  %659 = vmatpush3.bf16.msra.mxu1 %v658_v55  ;;  %v670_v29 = vpack.c.bf16 %v186_v24, %v185_v23  ;;  %v235_v33 = vld [vmem:[#allocation9 + $0x200] sm:$0xff]  ;;  %v236_v34 = vld [vmem:[#allocation9 + $0x208] sm:$0xff]  ;;  %v229_v35 = vld [vmem:[#allocation9 + $0x1d0] sm:$0xff]  ;;  %v690_v37 = vpack.c.bf16 %v212_v32, %v211_v30 }
  0x60   :  { %677 = vmatprep.subr.bf16.mxu0 %v676_v58  ;;  %661 = vmatprep.subr.bf16.mxu1 %v660_v59  ;;  %v230_v36 = vld [vmem:[#allocation9 + $0x1d8] sm:$0xff]  ;;  %v165_v38 = vld [vmem:[#allocation6] sm:$0xff]  ;;  %v705_v40 = vpack.c.bf16 %v236_v34, %v235_v33  ;;  %v231_v45 = vld [vmem:[#allocation9 + $0x1e0] sm:$0xff] }
  0x61   :  { %381 = vmatprep.mubr.f32.mxu0 %v168_v27  ;;  %v213_v39 = vld [vmem:[#allocation9 + $0x150] sm:$0xff]  ;;  %v692_v41 = vpack.c.bf16 %v230_v36, %v229_v35  ;;  %v214_v42 = vld [vmem:[#allocation9 + $0x158] sm:$0xff]  ;;  %v232_v46 = vld [vmem:[#allocation9 + $0x1e8] sm:$0xff] }
  0x62   :  { %v237_v43 = vld [vmem:[#allocation9 + $0x210] sm:$0xff]  ;;  %v238_v44 = vld [vmem:[#allocation9 + $0x218] sm:$0xff]  ;;  %v694_v47 = vpack.c.bf16 %v214_v42, %v213_v39  ;;  %v215_v48 = vld [vmem:[#allocation9 + $0x160] sm:$0xff]  ;;  %v696_v50 = vpack.c.bf16 %v232_v46, %v231_v45 }
  0x63   :  { %679 = vmatpush3.bf16.msra.mxu0 %v678_v5  ;;  %663 = vmatpush3.bf16.msra.mxu1 %v662_v6  ;;  %v708_v49 = vpack.c.bf16 %v238_v44, %v237_v43  ;;  %v216_v51 = vld [vmem:[#allocation9 + $0x168] sm:$0xff]  ;;  %v239_v52 = vld [vmem:[#allocation9 + $0x220] sm:$0xff]  ;;  %v233_v54 = vld [vmem:[#allocation9 + $0x1f0] sm:$0xff]  ;;  %v467_v5 = vshrl.u32 %v466_v4, 7 }
  0x64   :  { %681 = vmatprep.subr.bf16.mxu0 %v680_v9  ;;  %665 = vmatprep.subr.bf16.mxu1 %v664_v10  ;;  %v240_v53 = vld [vmem:[#allocation9 + $0x228] sm:$0xff]  ;;  %v234_v55 = vld [vmem:[#allocation9 + $0x1f8] sm:$0xff]  ;;  %v698_v56 = vpack.c.bf16 %v216_v51, %v215_v48  ;;  %v217_v57 = vld [vmem:[#allocation9 + $0x170] sm:$0xff] }
  0x65   :  { %v711_v58 = vpack.c.bf16 %v240_v53, %v239_v52  ;;  %v700_v59 = vpack.c.bf16 %v234_v55, %v233_v54  ;;  %v218_v60 = vld [vmem:[#allocation9 + $0x178] sm:$0xff]  ;;  %v241_v61 = vld [vmem:[#allocation9 + $0x230] sm:$0xff]  ;;  %v468_v6 = vsub.s32 0, %v467_v5  ;;  %v464_v7 = vld [vmem:[%s965_s4] sm:$0x3]  ;;  %v472_v16 = vsub.s32 1, %v467_v5 }
  0x66   :  { %v242_v62 = vld [vmem:[#allocation9 + $0x238] sm:$0xff]  ;;  %v702_v63 = vpack.c.bf16 %v218_v60, %v217_v57  ;;  %v169_v3 = vld [vmem:[#allocation6 + $0x20] sm:$0xff]  ;;  %s814_s4 = scalar_lea.vmem %s487_s16, 256 }
  0x67   :  { %683 = vmatpush3.bf16.msra.mxu0 %v682_v17  ;;  %667 = vmatpush3.bf16.msra.mxu1 %v666_v18  ;;  %v714_v2 = vpack.c.bf16 %v242_v62, %v241_v61  ;;  %v469_v8 = vrot.slane %v464_v7, %v468_v6  ;;  %v473_v21 = vrot.slane %v464_v7, %v472_v16  ;;  %p815_p4 = scmp.ne.s32.totalorder %s487_s16, %s814_s4  ;;  %p820_p6 = scmp.lt.s32.totalorder %s814_s4, %s814_s4 }
  0x68   :  { %685 = vmatprep.subr.bf16.mxu0 %v684_v20  ;;  %669 = vmatprep.subr.bf16.mxu1 %v668_v22 }
  0x69   :  { %p821_p7 = por %p820_p6, %p819_p5 }
  0x6b   :  { %687 = vmatpush3.bf16.msra.mxu0 %v686_v28  ;;  %671 = vmatpush3.bf16.msra.mxu1 %v670_v29  ;;  %p822_p8 = pnand %p821_p7, %p815_p4 }
  0x6c   :  { %689 = vmatprep.subr.bf16.mxu0 %v688_v31  ;;  %704 = vmatprep.subr.bf16.mxu1 %v850_v0 }
  0x6e   :  { %312 = vmatmul.mubr.f32.vlgmr.msra.gmra.mrb[0].mxu1 %v165_v38 }
  0x6f   :  { %691 = vmatpush3.bf16.msra.mxu0 %v690_v37  ;;  %706 = vmatpush3.bf16.msra.mxu1 %v705_v40 }
  0x70   :  { %693 = vmatprep.subr.bf16.mxu0 %v692_v41  ;;  %707 = vmatprep.subr.bf16.mxu1 %v850_v0 }
  0x71   :  { %625 = vmatprep.mubr.msk.f32.mxu1 %vm851_vm0, %v852_v1  ;;  %v167_v1 = vld [vmem:[#allocation6 + $0x10] sm:$0xff] }
  0x73   :  { %695 = vmatpush3.bf16.msra.mxu0 %v694_v47  ;;  %709 = vmatpush3.bf16.msra.mxu1 %v708_v49 }
  0x74   :  { %697 = vmatprep.subr.bf16.mxu0 %v696_v50  ;;  %710 = vmatprep.subr.bf16.mxu1 %v850_v0 }
  0x77   :  { %699 = vmatpush3.bf16.msra.mxu0 %v698_v56  ;;  %712 = vmatpush3.bf16.msra.mxu1 %v711_v58 }
  0x78   :  { %701 = vmatprep.subr.bf16.mxu0 %v700_v59  ;;  %713 = vmatprep.subr.bf16.mxu1 %v850_v0 }
  0x7b   :  { %703 = vmatpush3.bf16.msra.mxu0 %v702_v63  ;;  %715 = vmatpush3.bf16.msra.mxu1 %v714_v2 }
  0x7e   :  { %382 = vmatmul.mubr.f32.vlgmr.msra.gmra.mrb[2].mxu0 %v167_v1  ;;  %626 = vmatmul.mubr.msk.f32.vlgmr.msra.gmra.mrb[2].mxu1 %vm243_vm2, %v169_v3 }
 0x131   :  { %v159_v9 = vpop.f32.mrb[0].mxu0 }
 0x132   :  { %v476_v10 = vmul.f32 %v469_v8, %v159_v9  ;;  %v608_v11 = vpop.f32.mrb[1].mxu0 }
 0x134   :  { %478 = vst [vmem:[#allocation11] sm:$0xff] %v476_v10 }
 0x141   :  { %v541_v0 = vpop.f32.mrb[0].mxu1 }
 0x142   :  { %v542_v12 = vpop.f32.mrb[1].mxu1 }
 0x143   :  { %v543_v13 = vadd.f32 %v542_v12, %v541_v0 }
 0x151   :  { %v576_v14 = vpop.f32.mrb[2].mxu0  ;;  %v453_v15 = vpop.f32.mrb[2].mxu1 }
 0x152   :  { %v577_v17 = vpop.f32.mrb[3].mxu0  ;;  %v627_v18 = vpop.f32.mrb[3].mxu1 }
 0x153   :  { %v578_v19 = vadd.f32 %v577_v17, %v576_v14 }
 0x155   :  { %v384_v20 = vadd.f32 %v578_v19, %v543_v13 }
 0x157   :  { %v454_v22 = vadd.f32 %v453_v15, %v384_v20 }
 0x159   :  { %v477_v23 = vmul.f32 %v473_v21, %v454_v22 }
 0x15b   :  { %479 = vst [vmem:[#allocation11 + $0x8] sm:$0xff] %v477_v23 }
 0x15c   :  { %825 = shalt.err (!%p822_p8)
}
 0x15d   :  { %s826_s19 = scalar_lea.hbm %s966_s5, 256 }
 0x15e   :  { %p827_p9 = scmp.ne.s32.totalorder %s966_s5, %s826_s19  ;;  %p830_p10 = scmp.lt.u32.totalorder %s826_s19, %s966_s5 }
 0x160   :  { %p832_p11 = pnand %p830_p10, %p827_p9 }
 0x162   :  { %835 = shalt.err (!%p832_p11)
}
 0x163   :  { %489 = dma.vmem_to_hbm [thread:$0]  %s487_s16, 256, %s966_s5, [#allocation5]  }
 0x164   :  { %842 = dma.done.wait [#allocation5], 256  }
 0x165   :  { %843 = vsyncadd [#allocation5], 4294967040 }
 0x166   :  { %493 = vsyncpa [#allocation4], 1 }
 0x167   :  { %494 = vsyncpa [#allocation7], 1 }
 0x168   :  { %495 = vsyncpa [#allocation10], 1 }
 0x169   :  { %496 = vsyncpa [#allocation5], 1 }

</bundles_post_ra>
